<compile_context>
chip_gen: v5e
topology: v5e:2x2
jax: 0.10.0
libtpu: 0.0.40
codegen_flags: <defaults>
</compile_context>

<pallas_src>
import math

import jax
import jax.numpy as jnp
from jax.experimental import pallas as pl
from jax.experimental.pallas import tpu as pltpu

# ----------------------------------------------------------------------------
# Model dimensions (State.get_feature_length() is synthetic here).
# ----------------------------------------------------------------------------
FEATURE_LEN = 32          # stand-in for State.get_feature_length()
SHARED_LAYERS = [FEATURE_LEN, 128, 128]         # final_activation=False
VALUE_LAYERS = [FEATURE_LEN, 128, 128, 64, 1]   # final_activation=False
DICE_LAYERS = [128, 64, 5]                      # final_activation=False
CAT_LAYERS = [128, 64, 13]                      # final_activation=False

STAGE_W = 256            # fused hidden width (shared||value, dice||cat||value)
OUT_W = 128              # fused lane-dense output slab width
N_DICE = DICE_LAYERS[-1]     # 5
N_CAT = CAT_LAYERS[-1]       # 13
N_VAL = VALUE_LAYERS[-1]     # 1


def _cdiv(a, b):
    return -(-a // b)


def _round_up(a, m):
    return _cdiv(a, m) * m


def _init_linear(key, fan_in, fan_out):
    """Deterministic init mimicking PyTorch nn.Linear default (uniform +-1/sqrt(fan_in))."""
    kw, kb = jax.random.split(key)
    bound = 1.0 / math.sqrt(fan_in)
    w = jax.random.uniform(kw, (fan_in, fan_out), jnp.float32, -bound, bound)
    b = jax.random.uniform(kb, (1, fan_out), jnp.float32, -bound, bound)
    return w, b


def _init_mlp(key, layers):
    params = []
    keys = jax.random.split(key, len(layers) - 1)
    for i in range(1, len(layers)):
        params.append(_init_linear(keys[i - 1], layers[i - 1], layers[i]))
    return params  # list of (W [in, out], b [1, out])


# ----------------------------------------------------------------------------
# Parameter packing: 21 small tensors -> 3 tight weight buffers + 1 bias slab.
# ----------------------------------------------------------------------------
def _pack_params(params, compute_dtype):
    shared_p, dice_p, cat_p, value_p = params
    (ws0, bs0), (ws1, bs1) = shared_p
    (wd0, bd0), (wd1, bd1) = dice_p
    (wc0, bc0), (wc1, bc1) = cat_p
    (wv0, bv0), (wv1, bv1), (wv2, bv2), (wv3, bv3) = value_p

    f = ws0.shape[0]

    # stage 0: one K=32 matmul over raw x -> [shared hidden | value hidden]
    w0 = jnp.zeros((f, STAGE_W), jnp.float32)
    w0 = w0.at[:, 0:128].set(ws0)
    w0 = w0.at[:, 128:256].set(wv0)

    # stages 1 & 2
    w12 = jnp.zeros((2, STAGE_W, STAGE_W), jnp.float32)
    # stage 1: block-diagonal shared.1 (+) value.1
    w12 = w12.at[0, 0:128, 0:128].set(ws1)
    w12 = w12.at[0, 128:256, 128:256].set(wv1)
    # stage 2: [dice hidden | cat hidden | value hidden2]
    w12 = w12.at[1, 0:128, 0:64].set(wd0)
    w12 = w12.at[1, 0:128, 64:128].set(wc0)
    w12 = w12.at[1, 128:256, 128:192].set(wv2)

    # stage 3: fused output slab [dice logits | cat logits | value | zero pad]
    w3 = jnp.zeros((STAGE_W, OUT_W), jnp.float32)
    w3 = w3.at[0:64, 0:N_DICE].set(wd1)
    w3 = w3.at[64:128, N_DICE:N_DICE + N_CAT].set(wc1)
    w3 = w3.at[128:192, N_DICE + N_CAT:N_DICE + N_CAT + N_VAL].set(wv3)

    # biases (f32 epilogue); stage-3 bias only uses the first OUT_W lanes.
    b = jnp.zeros((4, 1, STAGE_W), jnp.float32)
    b = b.at[0, 0, 0:128].set(bs0[0])
    b = b.at[0, 0, 128:256].set(bv0[0])
    b = b.at[1, 0, 0:128].set(bs1[0])
    b = b.at[1, 0, 128:256].set(bv1[0])
    b = b.at[2, 0, 0:64].set(bd0[0])
    b = b.at[2, 0, 64:128].set(bc0[0])
    b = b.at[2, 0, 128:192].set(bv2[0])
    b = b.at[3, 0, 0:N_DICE].set(bd1[0])
    b = b.at[3, 0, N_DICE:N_DICE + N_CAT].set(bc1[0])
    b = b.at[3, 0, N_DICE + N_CAT:N_DICE + N_CAT + N_VAL].set(bv3[0])

    # weights in compute dtype (bf16 MXU inputs); biases/epilogue stay f32.
    return (w0.astype(compute_dtype), w12.astype(compute_dtype),
            w3.astype(compute_dtype), b)


# ----------------------------------------------------------------------------
# Pallas kernel: one batch tile through all four fused stages.
# ----------------------------------------------------------------------------
def policy_model_kernel(x_ref, w0_ref, w12_ref, w3_ref, b_ref, out_ref):
    cdt = w0_ref.dtype

    # stage 0 (K = FEATURE_LEN = 32): [relu(x@Ws0+bs0) | relu(x@Wv0+bv0)]
    h = jnp.dot(x_ref[...], w0_ref[...],
                preferred_element_type=jnp.float32)             # [TB, 256] f32
    h = jnp.maximum(h + b_ref[0], 0.0)

    # stage 1: block-diag -> [shared embedding (no ReLU) | value hidden (ReLU)]
    h = jnp.dot(h.astype(cdt), w12_ref[0],
                preferred_element_type=jnp.float32) + b_ref[1]
    # Static lane split at the 128 (vreg) boundary: no iota/compare/select.
    h = jnp.concatenate([h[:, :128], jnp.maximum(h[:, 128:], 0.0)], axis=-1)

    # stage 2: [dice hidden | cat hidden | value hidden2], all ReLU
    h = jnp.dot(h.astype(cdt), w12_ref[1],
                preferred_element_type=jnp.float32)
    h = jnp.maximum(h + b_ref[2], 0.0)

    # stage 3: single lane-dense output slab [TB, 128]
    out = jnp.dot(h.astype(cdt), w3_ref[...],
                  preferred_element_type=jnp.float32)
    out_ref[...] = (out + b_ref[3, :, :OUT_W]).astype(out_ref.dtype)


# ----------------------------------------------------------------------------
# Adaptive batch tiling.
# ----------------------------------------------------------------------------
def _choose_tile_b(batch, compute_dtype, max_tile=1024):
    """Pick tile_b so tiny batches use one minimal tile and larger batches get an
    even number of tiles (v7x megacore) of up to `max_tile` rows."""
    sub = 16 if compute_dtype == jnp.bfloat16 else 8
    if batch < 256:
        return _round_up(max(batch, 1), sub)            # single tile, latency path
    if batch <= 2 * max_tile:
        return _round_up(_cdiv(batch, 2), sub)          # 2 even tiles
    n_tiles = _round_up(_cdiv(batch, max_tile), 2)      # even tile count
    return _round_up(_cdiv(batch, n_tiles), sub)


# ----------------------------------------------------------------------------
# Wrapper: tile the batch, pack params, split the fused output slab.
# ----------------------------------------------------------------------------
def policy_model_forward(state_vector, params, *, compute_dtype=jnp.bfloat16,
                         tile_b=None):
    """state_vector: [B, FEATURE_LEN] float32. Returns (dice_logits, category_logits, value)."""
    w0, w12, w3, b_slab = _pack_params(params, compute_dtype)

    batch, feat = state_vector.shape
    if tile_b is None:
        tile_b = _choose_tile_b(batch, compute_dtype)
    n_tiles = _cdiv(batch, tile_b)
    b_pad = n_tiles * tile_b

    # Only pad the batch dimension (never the 32-wide feature dim).
    x = state_vector.astype(compute_dtype)
    if b_pad != batch:
        x = jnp.pad(x, ((0, b_pad - batch), (0, 0)))

    out = pl.pallas_call(
        policy_model_kernel,
        out_shape=jax.ShapeDtypeStruct((b_pad, OUT_W), jnp.float32),
        grid=(n_tiles,),
        in_specs=[
            pl.BlockSpec((tile_b, feat), lambda i: (i, 0)),              # x tile (unpadded K)
            pl.BlockSpec((feat, STAGE_W), lambda i: (0, 0)),             # stage-0 weights
            pl.BlockSpec((2, STAGE_W, STAGE_W), lambda i: (0, 0, 0)),    # stage-1/2 weights
            pl.BlockSpec((STAGE_W, OUT_W), lambda i: (0, 0)),            # stage-3 weights
            pl.BlockSpec((4, 1, STAGE_W), lambda i: (0, 0, 0)),          # biases (f32)
        ],
        out_specs=pl.BlockSpec((tile_b, OUT_W), lambda i: (i, 0)),
        compiler_params=pltpu.CompilerParams(
            dimension_semantics=("parallel",)),
    )(x, w0, w12, w3, b_slab)

    dice = out[:batch, 0:N_DICE]
    cat = out[:batch, N_DICE:N_DICE + N_CAT]
    value = out[:batch, N_DICE + N_CAT:N_DICE + N_CAT + N_VAL]
    return dice, cat, value


# ----------------------------------------------------------------------------
# Pure-JAX reference for correctness checks.
# ----------------------------------------------------------------------------
def _ref_forward(x, params):
    shared_p, dice_p, cat_p, value_p = params

    def mlp(h, layer_params, final_activation=False):
        n = len(layer_params)
        for i, (w, b) in enumerate(layer_params):
            h = h @ w + b
            if i < n - 1 or final_activation:
                h = jnp.maximum(h, 0.0)
        return h

    shared = mlp(x, shared_p)
    return mlp(shared, dice_p), mlp(shared, cat_p), mlp(x, value_p)


if __name__ == "__main__":
    key = jax.random.PRNGKey(0)
    k_x, k_s, k_d, k_c, k_v, k_x2 = jax.random.split(key, 6)

    params = (
        _init_mlp(k_s, SHARED_LAYERS),
        _init_mlp(k_d, DICE_LAYERS),
        _init_mlp(k_c, CAT_LAYERS),
        _init_mlp(k_v, VALUE_LAYERS),
    )

    # --- small batch, f32 compute (tight tolerance; single tiny tile) ---
    batch = 2
    x_small = jax.random.normal(k_x, (batch, FEATURE_LEN), jnp.float32)
    rd, rc, rv = _ref_forward(x_small, params)
    dice, cat, val = jax.block_until_ready(
        policy_model_forward(x_small, params, compute_dtype=jnp.float32))
    assert dice.shape == (batch, N_DICE)
    assert cat.shape == (batch, N_CAT)
    assert val.shape == (batch, N_VAL)
    assert jnp.allclose(dice, rd, atol=1e-4)
    assert jnp.allclose(cat, rc, atol=1e-4)
    assert jnp.allclose(val, rv, atol=1e-4)

    # --- small batch, default bf16 MXU inputs (f32 accumulate + f32 epilogue) ---
    dice_b, cat_b, val_b = jax.block_until_ready(
        policy_model_forward(x_small, params))
    assert jnp.allclose(dice_b, rd, atol=2e-1)
    assert jnp.allclose(cat_b, rc, atol=2e-1)
    assert jnp.allclose(val_b, rv, atol=2e-1)

    # --- multi-tile batch, f32 (exercises even 2-tile grid + batch padding) ---
    batch2 = 520
    x_big = jax.random.normal(k_x2, (batch2, FEATURE_LEN), jnp.float32)
    rd2, rc2, rv2 = _ref_forward(x_big, params)
    dice2, cat2, val2 = jax.block_until_ready(
        policy_model_forward(x_big, params, compute_dtype=jnp.float32))
    assert dice2.shape == (batch2, N_DICE)
    assert jnp.allclose(dice2, rd2, atol=1e-4)
    assert jnp.allclose(cat2, rc2, atol=1e-4)
    assert jnp.allclose(val2, rv2, atol=1e-4)

    # --- multi-tile batch, default bf16 ---
    dice3, cat3, val3 = jax.block_until_ready(
        policy_model_forward(x_big, params))
    assert jnp.allclose(dice3, rd2, atol=2e-1)
    assert jnp.allclose(cat3, rc2, atol=2e-1)
    assert jnp.allclose(val3, rv2, atol=2e-1)

    print("KERNEL_OK")
</pallas_src>

<mosaic_0001>
module attributes {stable_mosaic.version = 11 : i64} {
  func.func @policy_model_kernel(%arg0: i32, %arg1: memref<8x32xf32, #tpu.memory_space<vmem>>, %arg2: memref<32x256xf32, #tpu.memory_space<vmem>>, %arg3: memref<2x256x256xf32, #tpu.memory_space<vmem>>, %arg4: memref<256x128xf32, #tpu.memory_space<vmem>>, %arg5: memref<4x1x256xf32, #tpu.memory_space<vmem>>, %arg6: memref<8x128xf32, #tpu.memory_space<vmem>>) attributes {dimension_semantics = [#tpu.dimension_semantics<parallel>], iteration_bounds = array<i64: 1>, scalar_prefetch = 0 : i64, scratch_operands = 0 : i64, tpu.core_type = #tpu.core_type<tc>, window_params = [{transform_indices = @transform_0, window_bounds = array<i64: 8, 32>}, {pipeline_mode = #tpu.pipeline_mode<synchronous>, transform_indices = @transform_1, window_bounds = array<i64: 32, 256>}, {pipeline_mode = #tpu.pipeline_mode<synchronous>, transform_indices = @transform_2, window_bounds = array<i64: 2, 256, 256>}, {pipeline_mode = #tpu.pipeline_mode<synchronous>, transform_indices = @transform_3, window_bounds = array<i64: 256, 128>}, {pipeline_mode = #tpu.pipeline_mode<synchronous>, transform_indices = @transform_4, window_bounds = array<i64: 4, 1, 256>}, {transform_indices = @transform_5, window_bounds = array<i64: 8, 128>}]} {
    %c0 = arith.constant 0 : index
    %c0_0 = arith.constant 0 : index
    %0 = vector.load %arg1[%c0, %c0_0] : memref<8x32xf32, #tpu.memory_space<vmem>>, vector<8x32xf32>
    %c0_1 = arith.constant 0 : index
    %c0_2 = arith.constant 0 : index
    %1 = vector.load %arg2[%c0_1, %c0_2] : memref<32x256xf32, #tpu.memory_space<vmem>>, vector<32x256xf32>
    %cst = arith.constant dense<0.000000e+00> : vector<8x256xf32>
    %2 = tpu.matmul %0, %1, %cst {dimension_numbers = #tpu.dot_dimension_numbers<[1], [0], [0], [1], [0, 0, 1, 1], [], []>} : vector<8x32xf32>, vector<32x256xf32>, vector<8x256xf32> -> vector<8x256xf32>
    %c0_3 = arith.constant 0 : index
    %c0_4 = arith.constant 0 : index
    %c0_5 = arith.constant 0 : index
    %3 = vector.load %arg5[%c0_3, %c0_4, %c0_5] : memref<4x1x256xf32, #tpu.memory_space<vmem>>, vector<1x1x256xf32>
    %4 = vector.shape_cast %3 : vector<1x1x256xf32> to vector<1x256xf32>
    %5 = vector.broadcast %4 : vector<1x256xf32> to vector<8x256xf32>
    %6 = arith.addf %2, %5 : vector<8x256xf32>
    %cst_6 = arith.constant 0.000000e+00 : f32
    %7 = vector.broadcast %cst_6 : f32 to vector<8x256xf32>
    %8 = arith.maximumf %6, %7 : vector<8x256xf32>
    %c0_7 = arith.constant 0 : index
    %c0_8 = arith.constant 0 : index
    %c0_9 = arith.constant 0 : index
    %9 = vector.load %arg3[%c0_7, %c0_8, %c0_9] : memref<2x256x256xf32, #tpu.memory_space<vmem>>, vector<1x256x256xf32>
    %10 = vector.shape_cast %9 : vector<1x256x256xf32> to vector<256x256xf32>
    %cst_10 = arith.constant dense<0.000000e+00> : vector<8x256xf32>
    %11 = tpu.matmul %8, %10, %cst_10 {dimension_numbers = #tpu.dot_dimension_numbers<[1], [0], [0], [1], [0, 0, 1, 1], [], []>} : vector<8x256xf32>, vector<256x256xf32>, vector<8x256xf32> -> vector<8x256xf32>
    %c1 = arith.constant 1 : index
    %c0_11 = arith.constant 0 : index
    %c0_12 = arith.constant 0 : index
    %12 = vector.load %arg5[%c1, %c0_11, %c0_12] : memref<4x1x256xf32, #tpu.memory_space<vmem>>, vector<1x1x256xf32>
    %13 = vector.shape_cast %12 : vector<1x1x256xf32> to vector<1x256xf32>
    %14 = vector.broadcast %13 : vector<1x256xf32> to vector<8x256xf32>
    %15 = arith.addf %11, %14 : vector<8x256xf32>
    %16 = vector.extract_strided_slice %15 {offsets = [0, 0], sizes = [8, 128], strides = [1, 1]} : vector<8x256xf32> to vector<8x128xf32>
    %17 = vector.extract_strided_slice %15 {offsets = [0, 128], sizes = [8, 128], strides = [1, 1]} : vector<8x256xf32> to vector<8x128xf32>
    %cst_13 = arith.constant 0.000000e+00 : f32
    %18 = vector.broadcast %cst_13 : f32 to vector<8x128xf32>
    %19 = arith.maximumf %17, %18 : vector<8x128xf32>
    %20 = tpu.concatenate %16, %19 in 1 : vector<8x128xf32>, vector<8x128xf32> -> vector<8x256xf32>
    %c1_14 = arith.constant 1 : index
    %c0_15 = arith.constant 0 : index
    %c0_16 = arith.constant 0 : index
    %21 = vector.load %arg3[%c1_14, %c0_15, %c0_16] : memref<2x256x256xf32, #tpu.memory_space<vmem>>, vector<1x256x256xf32>
    %22 = vector.shape_cast %21 : vector<1x256x256xf32> to vector<256x256xf32>
    %cst_17 = arith.constant dense<0.000000e+00> : vector<8x256xf32>
    %23 = tpu.matmul %20, %22, %cst_17 {dimension_numbers = #tpu.dot_dimension_numbers<[1], [0], [0], [1], [0, 0, 1, 1], [], []>} : vector<8x256xf32>, vector<256x256xf32>, vector<8x256xf32> -> vector<8x256xf32>
    %c2 = arith.constant 2 : index
    %c0_18 = arith.constant 0 : index
    %c0_19 = arith.constant 0 : index
    %24 = vector.load %arg5[%c2, %c0_18, %c0_19] : memref<4x1x256xf32, #tpu.memory_space<vmem>>, vector<1x1x256xf32>
    %25 = vector.shape_cast %24 : vector<1x1x256xf32> to vector<1x256xf32>
    %26 = vector.broadcast %25 : vector<1x256xf32> to vector<8x256xf32>
    %27 = arith.addf %23, %26 : vector<8x256xf32>
    %cst_20 = arith.constant 0.000000e+00 : f32
    %28 = vector.broadcast %cst_20 : f32 to vector<8x256xf32>
    %29 = arith.maximumf %27, %28 : vector<8x256xf32>
    %c0_21 = arith.constant 0 : index
    %c0_22 = arith.constant 0 : index
    %30 = vector.load %arg4[%c0_21, %c0_22] : memref<256x128xf32, #tpu.memory_space<vmem>>, vector<256x128xf32>
    %cst_23 = arith.constant dense<0.000000e+00> : vector<8x128xf32>
    %31 = tpu.matmul %29, %30, %cst_23 {dimension_numbers = #tpu.dot_dimension_numbers<[1], [0], [0], [1], [0, 0, 1, 1], [], []>} : vector<8x256xf32>, vector<256x128xf32>, vector<8x128xf32> -> vector<8x128xf32>
    %c3 = arith.constant 3 : index
    %c0_24 = arith.constant 0 : index
    %c0_25 = arith.constant 0 : index
    %32 = vector.load %arg5[%c3, %c0_24, %c0_25] : memref<4x1x256xf32, #tpu.memory_space<vmem>>, vector<1x1x128xf32>
    %33 = vector.shape_cast %32 : vector<1x1x128xf32> to vector<1x128xf32>
    %34 = vector.broadcast %33 : vector<1x128xf32> to vector<8x128xf32>
    %35 = arith.addf %31, %34 : vector<8x128xf32>
    %c0_26 = arith.constant 0 : index
    %c0_27 = arith.constant 0 : index
    %36 = vector.load %arg6[%c0_26, %c0_27] : memref<8x128xf32, #tpu.memory_space<vmem>>, vector<8x128xf32>
    tpu.vector_store %arg6[%c0_26, %c0_27], %35 {strides = array<i32>} : memref<8x128xf32, #tpu.memory_space<vmem>>, vector<8x128xf32>,
    return
  }
  func.func @transform_0(%arg0: i32) -> (i32, i32) {
    %c0_i32 = arith.constant 0 : i32
    %c0_i32_0 = arith.constant 0 : i32
    return %arg0, %c0_i32 : i32, i32
  }
  func.func @transform_1(%arg0: i32) -> (i32, i32) {
    %c0_i32 = arith.constant 0 : i32
    %c0_i32_0 = arith.constant 0 : i32
    %c0_i32_1 = arith.constant 0 : i32
    return %c0_i32, %c0_i32_0 : i32, i32
  }
  func.func @transform_2(%arg0: i32) -> (i32, i32, i32) {
    %c0_i32 = arith.constant 0 : i32
    %c0_i32_0 = arith.constant 0 : i32
    %c0_i32_1 = arith.constant 0 : i32
    %c0_i32_2 = arith.constant 0 : i32
    return %c0_i32, %c0_i32_0, %c0_i32_1 : i32, i32, i32
  }
  func.func @transform_3(%arg0: i32) -> (i32, i32) {
    %c0_i32 = arith.constant 0 : i32
    %c0_i32_0 = arith.constant 0 : i32
    %c0_i32_1 = arith.constant 0 : i32
    return %c0_i32, %c0_i32_0 : i32, i32
  }
  func.func @transform_4(%arg0: i32) -> (i32, i32, i32) {
    %c0_i32 = arith.constant 0 : i32
    %c0_i32_0 = arith.constant 0 : i32
    %c0_i32_1 = arith.constant 0 : i32
    %c0_i32_2 = arith.constant 0 : i32
    return %c0_i32, %c0_i32_0, %c0_i32_1 : i32, i32, i32
  }
  func.func @transform_5(%arg0: i32) -> (i32, i32) {
    %c0_i32 = arith.constant 0 : i32
    %c0_i32_0 = arith.constant 0 : i32
    return %arg0, %c0_i32 : i32, i32
  }
}

</mosaic_0001>

<bundles_post_ra>
// kernel: tpu_custom_call.1
= control target key start
LH: loop header
LB: loop body
LE: loop exit
PB: predicated region body
PF: predicated region fallthrough
CT: control target
= control target key end

     0   :  { %10 = vsyncpa [#allocation3], 0  ;;  %s788_s0 = inlined_call_operand.hbm [shape: f32[8,32], index: 0, kind: input, shape index: {}]   ;;  %s789_s1 = inlined_call_operand.hbm [shape: f32[32,256], index: 1, kind: input, shape index: {}]   ;;  %s790_s2 = inlined_call_operand.hbm [shape: f32[2,256,256], index: 2, kind: input, shape index: {}]   ;;  %s791_s3 = inlined_call_operand.hbm [shape: f32[256,128], index: 3, kind: input, shape index: {}]   ;;  %s792_s4 = inlined_call_operand.hbm [shape: f32[4,1,256], index: 4, kind: input, shape index: {}]   ;;  %s793_s5 = inlined_call_operand.hbm [shape: f32[8,128], index: 5, kind: output, shape index: {}]  }
   0x1   :  { %11 = vsyncpa [#allocation6], 0 }
   0x2   :  { %12 = vsyncpa [#allocation9], 0  ;;  %s29_s20 = sshll.u32 %s789_s1, 4  ;;  %s30_s20 = int_to_ptr.hbm [resolvable:$true] %s29_s20 }
   0x3   :  { %13 = vsyncpa [#allocation4], 0  ;;  %s728_s21 = smov [#allocation5]   ;;  %s55_s25 = sshll.u32 %s791_s3, 4  ;;  %s56_s25 = int_to_ptr.hbm [resolvable:$true] %s55_s25 }
   0x4   :  { %s31_s22 = sshll.u32 %s728_s21, 4  ;;  %s729_s26 = smov 256   ;;  %s32_s22 = int_to_ptr.vmem [resolvable:$true] %s31_s22 }
   0x5   :  { %s730_s27 = smov 16   ;;  %s731_s28 = smov [#allocation8]  }
   0x6   :  { %37 = dma.hbm_to_vmem [thread:$0]  %s30_s20, 1024, %s32_s22, [#allocation6], %s729_s26, %s729_s26, %s730_s27  }
   0x7   :  { %s57_s29 = sshll.u32 %s731_s28, 4  ;;  %s732_s30 = smov 128   ;;  %s58_s29 = int_to_ptr.vmem [resolvable:$true] %s57_s29 }
   0x8   :  { %s733_s6 = smov 8   ;;  %s19_s8 = sshll.u32 %s788_s0, 4  ;;  %s20_s8 = int_to_ptr.hbm [resolvable:$true] %s19_s8 }
   0x9   :  { %63 = dma.hbm_to_vmem [thread:$0]  %s56_s25, 4096, %s58_s29, [#allocation9], %s732_s30, %s732_s30, %s733_s6  }
   0xa   :  { %s734_s9 = smov [#allocation2]   ;;  %s42_s12 = sshll.u32 %s790_s2, 4  ;;  %s43_s12 = int_to_ptr.hbm [resolvable:$true] %s42_s12 }
   0xb   :  { %s21_s10 = sshll.u32 %s734_s9, 4  ;;  %s735_s13 = smov [#allocation7]   ;;  %s22_s10 = int_to_ptr.vmem [resolvable:$true] %s21_s10 }
   0xc   :  { %24 = dma.hbm_to_vmem [thread:$0]  %s20_s8, 128, %s22_s10, [#allocation3]  }
   0xd   :  { %s44_s14 = sshll.u32 %s735_s13, 4  ;;  %s68_s17 = sshll.u32 %s792_s4, 4  ;;  %s45_s14 = int_to_ptr.vmem [resolvable:$true] %s44_s14  ;;  %s69_s17 = int_to_ptr.hbm [resolvable:$true] %s68_s17 }
   0xe   :  { %50 = dma.hbm_to_vmem [thread:$0]  %s43_s12, 16384, %s45_s14, [#allocation6], %s729_s26, %s729_s26, %s730_s27  }
   0xf   :  { %s736_s0 = smov [#allocation10]   ;;  %s737_s19 = smov 32  }
  0x10   :  { %s70_s18 = sshll.u32 %s736_s0, 4  ;;  %s738_s20 = smov 2   ;;  %s71_s18 = int_to_ptr.vmem [resolvable:$true] %s70_s18 }
  0x11   :  { %76 = dma.hbm_to_vmem [thread:$0]  %s69_s17, 128, %s71_s18, [#allocation9], %s737_s19, %s737_s19, %s738_s20  }
  0x12   :  { %720 = dma.done.wait [#allocation3], 128  }
  0x13   :  { %721 = vsyncadd [#allocation3], 4294967168 }
  0x14   :  { %722 = dma.done.wait [#allocation6], 17408  }
  0x15   :  { %723 = vsyncadd [#allocation6], 4294949888 }
  0x16   :  { %724 = dma.done.wait [#allocation9], 4224  }
  0x17   :  { %725 = vsyncadd [#allocation9], 4294963072  ;;  %v104_v0 = vld [vmem:[#allocation5 + $0x30] sm:$0xff]  ;;  %v102_v1 = vld [vmem:[#allocation5 + $0x20] sm:$0xff]  ;;  %vm112_vm0 = vcmask 261120   ;;  %s739_s2 = smov [#allocation11]  }
  0x18   :  { %v105_v2 = vld [vmem:[#allocation5 + $0x38] sm:$0xff]  ;;  %128 = vmatpush.msra.mxu0 %v104_v0  ;;  %v103_v3 = vld [vmem:[#allocation5 + $0x28] sm:$0xff]  ;;  %v100_v4 = vld [vmem:[#allocation5 + $0x10] sm:$0xff]  ;;  %s547_s4 = sshll.u32 %s739_s2, 4  ;;  %s549_s23 = sshll.u32 %s793_s5, 4  ;;  %s548_s4 = int_to_ptr.vmem [resolvable:$true] %s547_s4  ;;  %s550_s23 = int_to_ptr.hbm [resolvable:$true] %s549_s23 }
  0x19   :  { %148 = vmatpush.msra.mxu1 %v105_v2  ;;  %v101_v5 = vld [vmem:[#allocation5 + $0x18] sm:$0xff]  ;;  %v188_v6 = vld [vmem:[#allocation7 + $0xf0] sm:$0xff]  ;;  %v186_v7 = vld [vmem:[#allocation7 + $0xe0] sm:$0xff] }
  0x1a   :  { %129 = vmatpush.msra.mxu0 %v102_v1  ;;  %v98_v8 = vld [vmem:[#allocation5] sm:$0xff]  ;;  %v99_v9 = vld [vmem:[#allocation5 + $0x8] sm:$0xff]  ;;  %229 = vmatpush.msra.mxu2 %v188_v6  ;;  %v220_v10 = vld [vmem:[#allocation7 + $0x1f0] sm:$0xff] }
  0x1b   :  { %149 = vmatpush.msra.mxu1 %v103_v3  ;;  %v97_v11 = vld [vmem:[#allocation2] sm:$0xff]  ;;  %249 = vmatpush.msra.mxu3 %v220_v10  ;;  %v184_v14 = vld [vmem:[#allocation7 + $0xd0] sm:$0xff]  ;;  %v218_v15 = vld [vmem:[#allocation7 + $0x1e0] sm:$0xff] }
  0x1c   :  { %130 = vmatpush.msra.mxu0 %v100_v4  ;;  %v189_v12 = vld [vmem:[#allocation7 + $0xf8] sm:$0xff]  ;;  %230 = vmatpush.msra.mxu2 %v186_v7  ;;  %v187_v16 = vld [vmem:[#allocation7 + $0xe8] sm:$0xff]  ;;  %v182_v18 = vld [vmem:[#allocation7 + $0xc0] sm:$0xff] }
  0x1d   :  { %150 = vmatpush.msra.mxu1 %v101_v5  ;;  %v221_v13 = vld [vmem:[#allocation7 + $0x1f8] sm:$0xff]  ;;  %v219_v17 = vld [vmem:[#allocation7 + $0x1e8] sm:$0xff]  ;;  %v216_v19 = vld [vmem:[#allocation7 + $0x1d0] sm:$0xff]  ;;  %250 = vmatpush.msra.mxu3 %v218_v15 }
  0x1e   :  { %131 = vmatpush.msra.mxu0 %v98_v8  ;;  %231 = vmatpush.msra.mxu2 %v184_v14  ;;  %v185_v20 = vld [vmem:[#allocation7 + $0xd8] sm:$0xff]  ;;  %v180_v22 = vld [vmem:[#allocation7 + $0xb0] sm:$0xff]  ;;  %v214_v23 = vld [vmem:[#allocation7 + $0x1c0] sm:$0xff] }
  0x1f   :  { %151 = vmatpush.msra.mxu1 %v99_v9  ;;  %561 = vmatmul.msk.f32.vlgmr.msra.gmra.mxu0 %vm112_vm0, %v97_v11  ;;  %v217_v21 = vld [vmem:[#allocation7 + $0x1d8] sm:$0xff]  ;;  %v183_v24 = vld [vmem:[#allocation7 + $0xc8] sm:$0xff]  ;;  %v178_v26 = vld [vmem:[#allocation7 + $0xa0] sm:$0xff] }
  0x20   :  { %562 = vmatmul.msk.f32.vlgmr.msra.gmra.mxu1 %vm112_vm0, %v97_v11  ;;  %269 = vmatpush.msrb.mxu0 %v189_v12  ;;  %v215_v25 = vld [vmem:[#allocation7 + $0x1c8] sm:$0xff]  ;;  %v212_v27 = vld [vmem:[#allocation7 + $0x1b0] sm:$0xff]  ;;  %v181_v28 = vld [vmem:[#allocation7 + $0xb8] sm:$0xff] }
  0x21   :  { %289 = vmatpush.msrb.mxu1 %v221_v13  ;;  %232 = vmatpush.msra.mxu2 %v182_v18  ;;  %v213_v29 = vld [vmem:[#allocation7 + $0x1b8] sm:$0xff]  ;;  %v176_v30 = vld [vmem:[#allocation7 + $0x90] sm:$0xff]  ;;  %v210_v31 = vld [vmem:[#allocation7 + $0x1a0] sm:$0xff] }
  0x22   :  { %270 = vmatpush.msrb.mxu0 %v187_v16  ;;  %251 = vmatpush.msra.mxu3 %v216_v19  ;;  %v179_v32 = vld [vmem:[#allocation7 + $0xa8] sm:$0xff]  ;;  %v174_v34 = vld [vmem:[#allocation7 + $0x80] sm:$0xff]  ;;  %v208_v35 = vld [vmem:[#allocation7 + $0x190] sm:$0xff] }
  0x23   :  { %290 = vmatpush.msrb.mxu1 %v219_v17  ;;  %233 = vmatpush.msra.mxu2 %v180_v22  ;;  %v211_v33 = vld [vmem:[#allocation7 + $0x1a8] sm:$0xff]  ;;  %v177_v36 = vld [vmem:[#allocation7 + $0x98] sm:$0xff]  ;;  %v172_v38 = vld [vmem:[#allocation7 + $0x70] sm:$0xff] }
  0x24   :  { %271 = vmatpush.msrb.mxu0 %v185_v20  ;;  %252 = vmatpush.msra.mxu3 %v214_v23  ;;  %v209_v37 = vld [vmem:[#allocation7 + $0x198] sm:$0xff]  ;;  %v206_v39 = vld [vmem:[#allocation7 + $0x180] sm:$0xff]  ;;  %v175_v40 = vld [vmem:[#allocation7 + $0x88] sm:$0xff] }
  0x25   :  { %291 = vmatpush.msrb.mxu1 %v217_v21  ;;  %234 = vmatpush.msra.mxu2 %v178_v26  ;;  %v207_v41 = vld [vmem:[#allocation7 + $0x188] sm:$0xff]  ;;  %v170_v42 = vld [vmem:[#allocation7 + $0x60] sm:$0xff]  ;;  %v204_v43 = vld [vmem:[#allocation7 + $0x170] sm:$0xff] }
  0x26   :  { %272 = vmatpush.msrb.mxu0 %v183_v24  ;;  %253 = vmatpush.msra.mxu3 %v212_v27  ;;  %v173_v44 = vld [vmem:[#allocation7 + $0x78] sm:$0xff]  ;;  %v168_v46 = vld [vmem:[#allocation7 + $0x50] sm:$0xff]  ;;  %v202_v47 = vld [vmem:[#allocation7 + $0x160] sm:$0xff] }
  0x27   :  { %292 = vmatpush.msrb.mxu1 %v215_v25  ;;  %235 = vmatpush.msra.mxu2 %v176_v30  ;;  %v205_v45 = vld [vmem:[#allocation7 + $0x178] sm:$0xff]  ;;  %v171_v48 = vld [vmem:[#allocation7 + $0x68] sm:$0xff]  ;;  %v166_v50 = vld [vmem:[#allocation7 + $0x40] sm:$0xff] }
  0x28   :  { %273 = vmatpush.msrb.mxu0 %v181_v28  ;;  %254 = vmatpush.msra.mxu3 %v210_v31  ;;  %v203_v49 = vld [vmem:[#allocation7 + $0x168] sm:$0xff]  ;;  %v200_v51 = vld [vmem:[#allocation7 + $0x150] sm:$0xff]  ;;  %v169_v52 = vld [vmem:[#allocation7 + $0x58] sm:$0xff] }
  0x29   :  { %293 = vmatpush.msrb.mxu1 %v213_v29  ;;  %236 = vmatpush.msra.mxu2 %v174_v34  ;;  %v201_v53 = vld [vmem:[#allocation7 + $0x158] sm:$0xff]  ;;  %v164_v54 = vld [vmem:[#allocation7 + $0x30] sm:$0xff]  ;;  %v198_v55 = vld [vmem:[#allocation7 + $0x140] sm:$0xff] }
  0x2a   :  { %274 = vmatpush.msrb.mxu0 %v179_v32  ;;  %255 = vmatpush.msra.mxu3 %v208_v35  ;;  %v167_v56 = vld [vmem:[#allocation7 + $0x48] sm:$0xff]  ;;  %v165_v58 = vld [vmem:[#allocation7 + $0x38] sm:$0xff]  ;;  %v162_v59 = vld [vmem:[#allocation7 + $0x20] sm:$0xff] }
  0x2b   :  { %294 = vmatpush.msrb.mxu1 %v211_v33  ;;  %237 = vmatpush.msra.mxu2 %v172_v38  ;;  %v199_v57 = vld [vmem:[#allocation7 + $0x148] sm:$0xff]  ;;  %v196_v60 = vld [vmem:[#allocation7 + $0x130] sm:$0xff]  ;;  %v197_v62 = vld [vmem:[#allocation7 + $0x138] sm:$0xff] }
  0x2c   :  { %275 = vmatpush.msrb.mxu0 %v177_v36  ;;  %256 = vmatpush.msra.mxu3 %v206_v39  ;;  %v163_v61 = vld [vmem:[#allocation7 + $0x28] sm:$0xff]  ;;  %v160_v63 = vld [vmem:[#allocation7 + $0x10] sm:$0xff]  ;;  %v194_v0 = vld [vmem:[#allocation7 + $0x120] sm:$0xff] }
  0x2d   :  { %295 = vmatpush.msrb.mxu1 %v209_v37  ;;  %238 = vmatpush.msra.mxu2 %v170_v42  ;;  %v161_v1 = vld [vmem:[#allocation7 + $0x18] sm:$0xff]  ;;  %v195_v2 = vld [vmem:[#allocation7 + $0x128] sm:$0xff]  ;;  %v158_v3 = vld [vmem:[#allocation7] sm:$0xff] }
  0x2e   :  { %276 = vmatpush.msrb.mxu0 %v175_v40  ;;  %257 = vmatpush.msra.mxu3 %v204_v43  ;;  %v192_v4 = vld [vmem:[#allocation7 + $0x110] sm:$0xff]  ;;  %v159_v5 = vld [vmem:[#allocation7 + $0x8] sm:$0xff]  ;;  %v193_v6 = vld [vmem:[#allocation7 + $0x118] sm:$0xff] }
  0x2f   :  { %296 = vmatpush.msrb.mxu1 %v207_v41  ;;  %239 = vmatpush.msra.mxu2 %v168_v46  ;;  %v190_v7 = vld [vmem:[#allocation7 + $0x100] sm:$0xff]  ;;  %v191_v8 = vld [vmem:[#allocation7 + $0x108] sm:$0xff]  ;;  %v373_v9 = vld [vmem:[#allocation7 + $0x3f0] sm:$0xff] }
  0x30   :  { %277 = vmatpush.msrb.mxu0 %v173_v44  ;;  %258 = vmatpush.msra.mxu3 %v202_v47  ;;  %v374_v10 = vld [vmem:[#allocation7 + $0x3f8] sm:$0xff]  ;;  %v371_v11 = vld [vmem:[#allocation7 + $0x3e0] sm:$0xff]  ;;  %v372_v12 = vld [vmem:[#allocation7 + $0x3e8] sm:$0xff] }
  0x31   :  { %297 = vmatpush.msrb.mxu1 %v205_v45  ;;  %240 = vmatpush.msra.mxu2 %v166_v50  ;;  %v341_v13 = vld [vmem:[#allocation7 + $0x2f0] sm:$0xff]  ;;  %v342_v15 = vld [vmem:[#allocation7 + $0x2f8] sm:$0xff]  ;;  %v339_v16 = vld [vmem:[#allocation7 + $0x2e0] sm:$0xff] }
  0x32   :  { %278 = vmatpush.msrb.mxu0 %v171_v48  ;;  %259 = vmatpush.msra.mxu3 %v200_v51  ;;  %v369_v14 = vld [vmem:[#allocation7 + $0x3d0] sm:$0xff]  ;;  %v370_v17 = vld [vmem:[#allocation7 + $0x3d8] sm:$0xff]  ;;  %v340_v18 = vld [vmem:[#allocation7 + $0x2e8] sm:$0xff] }
  0x33   :  { %298 = vmatpush.msrb.mxu1 %v203_v49  ;;  %241 = vmatpush.msra.mxu2 %v164_v54  ;;  %v367_v19 = vld [vmem:[#allocation7 + $0x3c0] sm:$0xff]  ;;  %v337_v20 = vld [vmem:[#allocation7 + $0x2d0] sm:$0xff]  ;;  %v338_v21 = vld [vmem:[#allocation7 + $0x2d8] sm:$0xff] }
  0x34   :  { %279 = vmatpush.msrb.mxu0 %v169_v52  ;;  %260 = vmatpush.msra.mxu3 %v198_v55  ;;  %v368_v22 = vld [vmem:[#allocation7 + $0x3c8] sm:$0xff]  ;;  %v335_v23 = vld [vmem:[#allocation7 + $0x2c0] sm:$0xff]  ;;  %v365_v24 = vld [vmem:[#allocation7 + $0x3b0] sm:$0xff] }
  0x35   :  { %299 = vmatpush.msrb.mxu1 %v201_v53  ;;  %242 = vmatpush.msra.mxu2 %v162_v59  ;;  %v336_v25 = vld [vmem:[#allocation7 + $0x2c8] sm:$0xff]  ;;  %v366_v26 = vld [vmem:[#allocation7 + $0x3b8] sm:$0xff]  ;;  %v333_v27 = vld [vmem:[#allocation7 + $0x2b0] sm:$0xff] }
  0x36   :  { %280 = vmatpush.msrb.mxu0 %v167_v56  ;;  %261 = vmatpush.msra.mxu3 %v196_v60  ;;  %v363_v28 = vld [vmem:[#allocation7 + $0x3a0] sm:$0xff]  ;;  %v334_v29 = vld [vmem:[#allocation7 + $0x2b8] sm:$0xff]  ;;  %v364_v30 = vld [vmem:[#allocation7 + $0x3a8] sm:$0xff] }
  0x37   :  { %300 = vmatpush.msrb.mxu1 %v199_v57  ;;  %243 = vmatpush.msra.mxu2 %v160_v63  ;;  %v331_v31 = vld [vmem:[#allocation7 + $0x2a0] sm:$0xff]  ;;  %v361_v32 = vld [vmem:[#allocation7 + $0x390] sm:$0xff]  ;;  %v332_v33 = vld [vmem:[#allocation7 + $0x2a8] sm:$0xff] }
  0x38   :  { %281 = vmatpush.msrb.mxu0 %v165_v58  ;;  %262 = vmatpush.msra.mxu3 %v194_v0  ;;  %v362_v34 = vld [vmem:[#allocation7 + $0x398] sm:$0xff]  ;;  %v329_v35 = vld [vmem:[#allocation7 + $0x290] sm:$0xff]  ;;  %v359_v36 = vld [vmem:[#allocation7 + $0x380] sm:$0xff] }
  0x39   :  { %301 = vmatpush.msrb.mxu1 %v197_v62  ;;  %244 = vmatpush.msra.mxu2 %v158_v3  ;;  %v330_v37 = vld [vmem:[#allocation7 + $0x298] sm:$0xff]  ;;  %v360_v38 = vld [vmem:[#allocation7 + $0x388] sm:$0xff]  ;;  %v327_v39 = vld [vmem:[#allocation7 + $0x280] sm:$0xff] }
  0x3a   :  { %282 = vmatpush.msrb.mxu0 %v163_v61  ;;  %263 = vmatpush.msra.mxu3 %v192_v4  ;;  %v357_v40 = vld [vmem:[#allocation7 + $0x370] sm:$0xff]  ;;  %v328_v41 = vld [vmem:[#allocation7 + $0x288] sm:$0xff]  ;;  %v358_v42 = vld [vmem:[#allocation7 + $0x378] sm:$0xff] }
  0x3b   :  { %302 = vmatpush.msrb.mxu1 %v195_v2  ;;  %382 = vmatpush.msrb.mxu2 %v341_v13  ;;  %v325_v43 = vld [vmem:[#allocation7 + $0x270] sm:$0xff]  ;;  %v355_v44 = vld [vmem:[#allocation7 + $0x360] sm:$0xff]  ;;  %v326_v45 = vld [vmem:[#allocation7 + $0x278] sm:$0xff] }
  0x3c   :  { %283 = vmatpush.msrb.mxu0 %v161_v1  ;;  %264 = vmatpush.msra.mxu3 %v190_v7  ;;  %v356_v46 = vld [vmem:[#allocation7 + $0x368] sm:$0xff]  ;;  %v323_v47 = vld [vmem:[#allocation7 + $0x260] sm:$0xff]  ;;  %v353_v48 = vld [vmem:[#allocation7 + $0x350] sm:$0xff] }
  0x3d   :  { %303 = vmatpush.msrb.mxu1 %v193_v6  ;;  %383 = vmatpush.msrb.mxu2 %v339_v16  ;;  %v324_v49 = vld [vmem:[#allocation7 + $0x268] sm:$0xff]  ;;  %v354_v50 = vld [vmem:[#allocation7 + $0x358] sm:$0xff]  ;;  %v106_v51 = vld [vmem:[#allocation10] sm:$0x3] }
  0x3e   :  { %284 = vmatpush.msrb.mxu0 %v159_v5  ;;  %402 = vmatpush.msrb.mxu3 %v373_v9  ;;  %v351_v52 = vld [vmem:[#allocation7 + $0x340] sm:$0xff]  ;;  %v352_v53 = vld [vmem:[#allocation7 + $0x348] sm:$0xff]  ;;  %v108_v54 = vperm.slane %v106_v51, 0  ;;  %v109_v55 = vperm.slane %v106_v51, 1  ;;  %v321_v62 = vld [vmem:[#allocation7 + $0x250] sm:$0xff] }
  0x3f   :  { %304 = vmatpush.msrb.mxu1 %v191_v8  ;;  %384 = vmatpush.msrb.mxu2 %v337_v20  ;;  %v349_v63 = vld [vmem:[#allocation7 + $0x330] sm:$0xff]  ;;  %v322_v0 = vld [vmem:[#allocation7 + $0x258] sm:$0xff]  ;;  %v319_v2 = vld [vmem:[#allocation7 + $0x240] sm:$0xff] }
  0x40   :  { %403 = vmatpush.msrb.mxu3 %v371_v11  ;;  %422 = vmatpush.msra.mxu0 %v342_v15  ;;  %v350_v1 = vld [vmem:[#allocation7 + $0x338] sm:$0xff]  ;;  %v347_v3 = vld [vmem:[#allocation7 + $0x320] sm:$0xff]  ;;  %v320_v4 = vld [vmem:[#allocation7 + $0x248] sm:$0xff] }
  0x41   :  { %442 = vmatpush.msra.mxu1 %v374_v10  ;;  %385 = vmatpush.msrb.mxu2 %v335_v23  ;;  %v348_v5 = vld [vmem:[#allocation7 + $0x328] sm:$0xff]  ;;  %v317_v6 = vld [vmem:[#allocation7 + $0x230] sm:$0xff]  ;;  %v318_v8 = vld [vmem:[#allocation7 + $0x238] sm:$0xff] }
  0x42   :  { %404 = vmatpush.msrb.mxu3 %v369_v14  ;;  %423 = vmatpush.msra.mxu0 %v340_v18  ;;  %v345_v7 = vld [vmem:[#allocation7 + $0x310] sm:$0xff]  ;;  %v346_v9 = vld [vmem:[#allocation7 + $0x318] sm:$0xff]  ;;  %v315_v10 = vld [vmem:[#allocation7 + $0x220] sm:$0xff] }
  0x43   :  { %443 = vmatpush.msra.mxu1 %v372_v12  ;;  %386 = vmatpush.msrb.mxu2 %v333_v27  ;;  %v343_v11 = vld [vmem:[#allocation7 + $0x300] sm:$0xff]  ;;  %v316_v12 = vld [vmem:[#allocation7 + $0x228] sm:$0xff]  ;;  %v313_v14 = vld [vmem:[#allocation7 + $0x210] sm:$0xff] }
  0x44   :  { %405 = vmatpush.msrb.mxu3 %v367_v19  ;;  %424 = vmatpush.msra.mxu0 %v338_v21  ;;  %v344_v13 = vld [vmem:[#allocation7 + $0x308] sm:$0xff]  ;;  %v314_v15 = vld [vmem:[#allocation7 + $0x218] sm:$0xff]  ;;  %v311_v16 = vld [vmem:[#allocation7 + $0x200] sm:$0xff] }
  0x45   :  { %444 = vmatpush.msra.mxu1 %v370_v17  ;;  %387 = vmatpush.msrb.mxu2 %v331_v31  ;;  %v312_v17 = vld [vmem:[#allocation7 + $0x208] sm:$0xff]  ;;  %v495_v18 = vld [vmem:[#allocation8 + $0xf8] sm:$0xff]  ;;  %v494_v19 = vld [vmem:[#allocation8 + $0xf0] sm:$0xff] }
  0x46   :  { %406 = vmatpush.msrb.mxu3 %v365_v24  ;;  %425 = vmatpush.msra.mxu0 %v336_v25  ;;  %v479_v20 = vld [vmem:[#allocation8 + $0x78] sm:$0xff]  ;;  %v478_v21 = vld [vmem:[#allocation8 + $0x70] sm:$0xff]  ;;  %v477_v23 = vld [vmem:[#allocation8 + $0x68] sm:$0xff] }
  0x47   :  { %445 = vmatpush.msra.mxu1 %v368_v22  ;;  %388 = vmatpush.msrb.mxu2 %v329_v35  ;;  %v493_v22 = vld [vmem:[#allocation8 + $0xe8] sm:$0xff]  ;;  %v492_v24 = vld [vmem:[#allocation8 + $0xe0] sm:$0xff]  ;;  %v475_v27 = vld [vmem:[#allocation8 + $0x58] sm:$0xff] }
  0x48   :  { %407 = vmatpush.msrb.mxu3 %v363_v28  ;;  %426 = vmatpush.msra.mxu0 %v334_v29  ;;  %v476_v25 = vld [vmem:[#allocation8 + $0x60] sm:$0xff]  ;;  %v490_v28 = vld [vmem:[#allocation8 + $0xd0] sm:$0xff]  ;;  %v473_v31 = vld [vmem:[#allocation8 + $0x48] sm:$0xff] }
  0x49   :  { %446 = vmatpush.msra.mxu1 %v366_v26  ;;  %389 = vmatpush.msrb.mxu2 %v327_v39  ;;  %v491_v26 = vld [vmem:[#allocation8 + $0xd8] sm:$0xff]  ;;  %v474_v29 = vld [vmem:[#allocation8 + $0x50] sm:$0xff] }
  0x4a   :  { %408 = vmatpush.msrb.mxu3 %v361_v32  ;;  %427 = vmatpush.msra.mxu0 %v332_v33  ;;  %v488_v32 = vld [vmem:[#allocation8 + $0xc0] sm:$0xff]  ;;  %v487_v33 = vld [vmem:[#allocation8 + $0xb8] sm:$0xff]  ;;  %v486_v35 = vld [vmem:[#allocation8 + $0xb0] sm:$0xff] }
  0x4b   :  { %447 = vmatpush.msra.mxu1 %v364_v30  ;;  %390 = vmatpush.msrb.mxu2 %v325_v43  ;;  %v489_v30 = vld [vmem:[#allocation8 + $0xc8] sm:$0xff]  ;;  %v470_v51 = vld [vmem:[#allocation8 + $0x30] sm:$0xff] }
  0x4c   :  { %409 = vmatpush.msrb.mxu3 %v359_v36  ;;  %428 = vmatpush.msra.mxu0 %v330_v37 }
  0x4d   :  { %448 = vmatpush.msra.mxu1 %v362_v34  ;;  %391 = vmatpush.msrb.mxu2 %v323_v47  ;;  %v223_v34 = vld [vmem:[#allocation10 + $0x2] sm:$0x3] }
  0x4e   :  { %410 = vmatpush.msrb.mxu3 %v357_v40  ;;  %429 = vmatpush.msra.mxu0 %v328_v41  ;;  %v226_v36 = vperm.slane %v223_v34, 1  ;;  %v225_v41 = vperm.slane %v223_v34, 0  ;;  %v472_v47 = vld [vmem:[#allocation8 + $0x40] sm:$0xff] }
  0x4f   :  { %449 = vmatpush.msra.mxu1 %v360_v38  ;;  %392 = vmatpush.msrb.mxu2 %v321_v62  ;;  %v376_v62 = vld [vmem:[#allocation10 + $0x4] sm:$0x3] }
  0x50   :  { %411 = vmatpush.msrb.mxu3 %v355_v44  ;;  %430 = vmatpush.msra.mxu0 %v326_v45 }
  0x51   :  { %450 = vmatpush.msra.mxu1 %v358_v42  ;;  %393 = vmatpush.msrb.mxu2 %v319_v2 }
  0x52   :  { %412 = vmatpush.msrb.mxu3 %v353_v48  ;;  %431 = vmatpush.msra.mxu0 %v324_v49  ;;  %v485_v48 = vld [vmem:[#allocation8 + $0xa8] sm:$0xff]  ;;  %v471_v49 = vld [vmem:[#allocation8 + $0x38] sm:$0xff] }
  0x53   :  { %451 = vmatpush.msra.mxu1 %v356_v46  ;;  %394 = vmatpush.msrb.mxu2 %v317_v6 }
  0x54   :  { %413 = vmatpush.msrb.mxu3 %v351_v52  ;;  %432 = vmatpush.msra.mxu0 %v322_v0  ;;  %v483_v52 = vld [vmem:[#allocation8 + $0x98] sm:$0xff] }
  0x55   :  { %452 = vmatpush.msra.mxu1 %v354_v50  ;;  %395 = vmatpush.msrb.mxu2 %v315_v10  ;;  %v484_v50 = vld [vmem:[#allocation8 + $0xa0] sm:$0xff] }
  0x56   :  { %414 = vmatpush.msrb.mxu3 %v349_v63  ;;  %433 = vmatpush.msra.mxu0 %v320_v4  ;;  %v379_v63 = vperm.slane %v376_v62, 1  ;;  %v378_v4 = vperm.slane %v376_v62, 0 }
  0x57   :  { %453 = vmatpush.msra.mxu1 %v352_v53  ;;  %396 = vmatpush.msrb.mxu2 %v313_v14  ;;  %v469_v53 = vld [vmem:[#allocation8 + $0x28] sm:$0xff] }
  0x58   :  { %415 = vmatpush.msrb.mxu3 %v347_v3  ;;  %434 = vmatpush.msra.mxu0 %v318_v8 }
  0x59   :  { %454 = vmatpush.msra.mxu1 %v350_v1  ;;  %397 = vmatpush.msrb.mxu2 %v311_v16 }
  0x5a   :  { %416 = vmatpush.msrb.mxu3 %v345_v7  ;;  %435 = vmatpush.msra.mxu0 %v316_v12 }
  0x5b   :  { %455 = vmatpush.msra.mxu1 %v348_v5 }
  0x5c   :  { %417 = vmatpush.msrb.mxu3 %v343_v11  ;;  %436 = vmatpush.msra.mxu0 %v314_v15  ;;  %v575_v11 = vld [vmem:[#allocation10 + $0x6] ss:$0 sm:$0xff] }
  0x5d   :  { %456 = vmatpush.msra.mxu1 %v346_v9 }
  0x5e   :  { %437 = vmatpush.msra.mxu0 %v312_v17 }
  0x5f   :  { %457 = vmatpush.msra.mxu1 %v344_v13 }
  0x9c   :  { %v133_v56 = vpop.f32.mrf.mxu0 }
  0x9d   :  { %v153_v57 = vpop.f32.mrf.mxu1  ;;  %v134_v58 = vadd.f32 %v133_v56, %v108_v54  ;;  %v482_v54 = vld [vmem:[#allocation8 + $0x90] sm:$0xff]  ;;  %v481_v56 = vld [vmem:[#allocation8 + $0x88] sm:$0xff] }
  0x9e   :  { %v154_v59 = vadd.f32 %v153_v57, %v109_v55  ;;  %v468_v55 = vld [vmem:[#allocation8 + $0x20] sm:$0xff]  ;;  %v467_v57 = vld [vmem:[#allocation8 + $0x18] sm:$0xff] }
  0x9f   :  { %v156_v60 = vmax.f32 %v134_v58, 0.0  ;;  %v480_v58 = vld [vmem:[#allocation8 + $0x80] sm:$0xff] }
  0xa0   :  { %v157_v61 = vmax.f32 %v154_v59, 0.0  ;;  %v466_v59 = vld [vmem:[#allocation8 + $0x10] sm:$0xff] }
  0xa1   :  { %245 = vmatmul.f32.vlgmr.msra.gmra.mxu2 %v156_v60  ;;  %285 = vmatmul.f32.vlgmr.msrb.gmra.mxu0 %v156_v60  ;;  %v465_v60 = vld [vmem:[#allocation8 + $0x8] sm:$0xff] }
  0xa2   :  { %265 = vmatmul.f32.vlgmr.msra.gmra.mxu3 %v157_v61  ;;  %305 = vmatmul.f32.vlgmr.msrb.gmra.mxu1 %v157_v61  ;;  %v464_v61 = vld [vmem:[#allocation8] sm:$0xff] }
  0xa3   :  { %521 = vmatpush.msra.mxu3 %v495_v18  ;;  %501 = vmatpush.msra.mxu2 %v479_v20 }
  0xa5   :  { %522 = vmatpush.msra.mxu3 %v494_v19  ;;  %502 = vmatpush.msra.mxu2 %v478_v21 }
  0xa7   :  { %523 = vmatpush.msra.mxu3 %v493_v22  ;;  %503 = vmatpush.msra.mxu2 %v477_v23 }
  0xa9   :  { %524 = vmatpush.msra.mxu3 %v492_v24  ;;  %504 = vmatpush.msra.mxu2 %v476_v25 }
  0xab   :  { %525 = vmatpush.msra.mxu3 %v491_v26  ;;  %505 = vmatpush.msra.mxu2 %v475_v27 }
  0xad   :  { %526 = vmatpush.msra.mxu3 %v490_v28  ;;  %506 = vmatpush.msra.mxu2 %v474_v29 }
  0xaf   :  { %527 = vmatpush.msra.mxu3 %v489_v30  ;;  %507 = vmatpush.msra.mxu2 %v473_v31 }
  0xb1   :  { %528 = vmatpush.msra.mxu3 %v488_v32  ;;  %508 = vmatpush.msra.mxu2 %v472_v47 }
  0xb3   :  { %529 = vmatpush.msra.mxu3 %v487_v33  ;;  %509 = vmatpush.msra.mxu2 %v471_v49 }
  0xb5   :  { %530 = vmatpush.msra.mxu3 %v486_v35  ;;  %510 = vmatpush.msra.mxu2 %v470_v51 }
  0xb7   :  { %531 = vmatpush.msra.mxu3 %v485_v48  ;;  %511 = vmatpush.msra.mxu2 %v469_v53 }
  0xb9   :  { %532 = vmatpush.msra.mxu3 %v484_v50  ;;  %512 = vmatpush.msra.mxu2 %v468_v55 }
  0xbb   :  { %533 = vmatpush.msra.mxu3 %v483_v52  ;;  %513 = vmatpush.msra.mxu2 %v467_v57 }
  0xbd   :  { %534 = vmatpush.msra.mxu3 %v482_v54  ;;  %514 = vmatpush.msra.mxu2 %v466_v59 }
  0xbf   :  { %535 = vmatpush.msra.mxu3 %v481_v56  ;;  %515 = vmatpush.msra.mxu2 %v465_v60 }
  0xc1   :  { %536 = vmatpush.msra.mxu3 %v480_v58  ;;  %516 = vmatpush.msra.mxu2 %v464_v61 }
 0x11e   :  { %v286_v37 = vpop.f32.mrf.mxu0 }
 0x11f   :  { %v287_v38 = vadd.f32 %v286_v37, %v226_v36  ;;  %v306_v39 = vpop.f32.mrf.mxu1 }
 0x121   :  { %v307_v40 = vadd.f32 %v306_v39, %v287_v38 }
 0x123   :  { %v309_v42 = vmax.f32 %v307_v40, 0.0 }
 0x124   :  { %v246_v43 = vpop.f32.mrf.mxu2 }
 0x125   :  { %v247_v44 = vadd.f32 %v246_v43, %v225_v41  ;;  %418 = vmatmul.f32.vlgmr.msrb.gmra.mxu3 %v309_v42  ;;  %458 = vmatmul.f32.vlgmr.msra.gmra.mxu1 %v309_v42  ;;  %v266_v45 = vpop.f32.mrf.mxu3 }
 0x127   :  { %v267_v46 = vadd.f32 %v266_v45, %v247_v44 }
 0x129   :  { %398 = vmatmul.f32.vlgmr.msrb.gmra.mxu2 %v267_v46  ;;  %438 = vmatmul.f32.vlgmr.msra.gmra.mxu0 %v267_v46 }
 0x1a2   :  { %v459_v2 = vpop.f32.mrf.mxu1 }
 0x1a6   :  { %v439_v0 = vpop.f32.mrf.mxu0 }
 0x1a7   :  { %v440_v1 = vadd.f32 %v439_v0, %v379_v63 }
 0x1a8   :  { %v419_v8 = vpop.f32.mrf.mxu3 }
 0x1a9   :  { %v460_v3 = vadd.f32 %v459_v2, %v440_v1 }
 0x1ab   :  { %v463_v5 = vmax.f32 %v460_v3, 0.0 }
 0x1ac   :  { %v399_v6 = vpop.f32.mrf.mxu2 }
 0x1ad   :  { %v400_v7 = vadd.f32 %v399_v6, %v378_v4  ;;  %537 = vmatmul.f32.vlgmr.msra.gmra.mxu3 %v463_v5 }
 0x1af   :  { %v420_v9 = vadd.f32 %v419_v8, %v400_v7 }
 0x1b1   :  { %v462_v10 = vmax.f32 %v420_v9, 0.0 }
 0x1b3   :  { %517 = vmatmul.f32.vlgmr.msra.gmra.mxu2 %v462_v10 }
 0x230   :  { %v538_v14 = vpop.f32.mrf.mxu3 }
 0x236   :  { %v518_v12 = vpop.f32.mrf.mxu2 }
 0x237   :  { %v519_v13 = vadd.f32 %v575_v11, %v518_v12 }
 0x239   :  { %v539_v15 = vadd.f32 %v538_v14, %v519_v13 }
 0x23b   :  { %541 = vst [vmem:[#allocation11] sm:$0xff] %v539_v15 }
 0x23c   :  { %552 = dma.vmem_to_hbm [thread:$0]  %s548_s4, 128, %s550_s23, [#allocation4]  }
 0x23d   :  { %726 = dma.done.wait [#allocation4], 128  }
 0x23e   :  { %727 = vsyncadd [#allocation4], 4294967168 }
 0x23f   :  { %557 = vsyncpa [#allocation3], 1 }
 0x240   :  { %558 = vsyncpa [#allocation6], 1 }
 0x241   :  { %559 = vsyncpa [#allocation9], 1 }
 0x242   :  { %560 = vsyncpa [#allocation4], 1 }

</bundles_post_ra>
